<compile_context>
chip_gen: v7x
topology: tpu7x:2x2x1
jax: 0.10.0
libtpu: 0.0.40
codegen_flags: <defaults>
</compile_context>

<pallas_src>
import functools

import jax
import jax.numpy as jnp
from jax.experimental import pallas as pl
from jax.experimental.pallas import tpu as pltpu


def _round_up(x: int, m: int) -> int:
    return ((x + m - 1) // m) * m


def _cdiv(a: int, b: int) -> int:
    return (a + b - 1) // b


def _vmem_capacity_bytes() -> int:
    """Per-core VMEM capacity; conservative fallback if the query is unavailable."""
    try:
        return int(pltpu.get_tpu_info().vmem_capacity_bytes)
    except Exception:
        return 64 << 20  # v7x per-core size: safe lower bound across v5e/v6e/v7x


@functools.lru_cache(maxsize=None)
def _single_buffer_supported() -> bool:
    """Probe whether this jax build accepts pipeline_mode=pl.Buffered(1) on TPU."""
    try:
        def _probe(x_ref, o_ref):
            o_ref[...] = x_ref[...]

        out = pl.pallas_call(
            _probe,
            out_shape=jax.ShapeDtypeStruct((8, 128), jnp.float32),
            grid=(1,),
            in_specs=[pl.BlockSpec((8, 128), lambda i: (0, 0),
                                   pipeline_mode=pl.Buffered(1))],
            out_specs=pl.BlockSpec((8, 128), lambda i: (0, 0)),
        )(jnp.zeros((8, 128), jnp.float32))
        jax.block_until_ready(out)
        return True
    except Exception:
        return False


def mlp_predictor_kernel(alpha_ref, x_ref, w1_ref, b1_ref, w2_ref, b2_ref,
                         o_ref, acc_ref):
    """One (batch-tile, hidden-chunk) grid step of Linear -> PReLU -> Linear."""
    k = pl.program_id(1)

    @pl.when(k == 0)
    def _init():
        acc_ref[...] = jnp.zeros_like(acc_ref)

    a = alpha_ref[0]                                   # PReLU slope (SMEM scalar)
    # Linear 1 (this hidden chunk): bf16 MXU inputs, f32 accumulation.
    h = jnp.dot(x_ref[...].astype(jnp.bfloat16), w1_ref[...],
                preferred_element_type=jnp.float32)
    h = h + b1_ref[...]                                # f32 bias [1, hc]
    # PReLU in f32 on the VPU; padded hidden columns are exactly zero -> stay zero.
    h = jnp.where(h > 0, h, a * h)
    # Linear 2 contribution of this hidden chunk, accumulated in f32.
    acc_ref[...] += jnp.dot(h.astype(jnp.bfloat16), w2_ref[...],
                            preferred_element_type=jnp.float32)

    @pl.when(k == pl.num_programs(1) - 1)
    def _finalize():
        o_ref[...] = (acc_ref[...] + b2_ref[...]).astype(o_ref.dtype)


def mlp_predictor(x, w1, b1, w2, b2, alpha, *, max_block_rows=2048):
    """Fused MLP predictor forward: PReLU(x @ W1 + b1) @ W2 + b2.  (jit-compatible)

    x:  [N, D_in]   (f32 or bf16; output dtype follows x)
    w1: [D_in, H]   (transpose of PyTorch's [H, D_in]),  b1: [1, H] or [H]
    w2: [H, D_out]  (transpose of PyTorch's [D_out, H]), b2: [1, D_out] or [D_out]
    alpha: [1] f32  (nn.PReLU(1) slope)
    """
    n, d_in = x.shape
    hidden = w1.shape[1]
    d_out = w2.shape[1]
    x_bytes = jnp.dtype(x.dtype).itemsize

    budget = (_vmem_capacity_bytes() * 7) // 8       # ~56 MiB v7x, ~112 MiB v5e/v6e

    # ---- hidden-dim plan: fully resident weights if they fit, else stream chunks ---
    h_chunk = _round_up(hidden, 128)
    while h_chunk > 512 and 2 * (d_in * h_chunk + h_chunk * d_out) > (budget * 3) // 5:
        h_chunk = _round_up(h_chunk // 2, 128)
    h_pad = _round_up(hidden, h_chunk)
    n_hchunks = h_pad // h_chunk
    resident = n_hchunks == 1
    single_buffer = resident and _single_buffer_supported()
    weight_copies = 1 if single_buffer else 2        # honest VMEM accounting

    # ---- VMEM accounting (drives tile size and vmem_limit_bytes) -------------------
    fixed = weight_copies * 2 * (d_in * h_chunk + h_chunk * d_out)   # bf16 W1/W2 chunk
    fixed += weight_copies * 8 * (h_chunk + max(d_out, 128)) * 4     # f32 biases (8-sublane pad)
    per_row = (2 * d_in * x_bytes        # x tile, double-buffered
               + 2 * d_out * x_bytes     # out tile, double-buffered
               + d_in * 2                # bf16 copy of the x tile
               + h_chunk * (4 + 2)       # f32 hidden activation + its bf16 copy
               + d_out * 4)              # f32 accumulator scratch
    tm_budget = max(8, ((budget - fixed) // per_row) // 8 * 8)

    # ---- batch tiling: big tiles, < 8 rows padding, >= 2 tiles for dual-TC chips ---
    tm_cap = max(8, min(_round_up(max_block_rows, 8), tm_budget))
    n_tiles = max(1, _cdiv(n, tm_cap))
    if n_tiles == 1 and n >= 16:
        n_tiles = 2                      # give both v7x TensorCores work on the batch
    tm = _round_up(_cdiv(n, n_tiles), 8)
    n_pad = n_tiles * tm
    xp = x if n_pad == n else jnp.pad(x, ((0, n_pad - n), (0, 0)))

    # Lane-dense hidden padding (zeros => math unchanged).  d_in and d_out are NOT
    # padded: output block's last dim equals the full array dim (legal), and padding
    # d_in would only add x DMA bytes on an HBM-bound kernel.
    w1p = jnp.zeros((d_in, h_pad), jnp.bfloat16).at[:, :hidden].set(
        w1.astype(jnp.bfloat16))
    b1p = jnp.zeros((1, h_pad), jnp.float32).at[:, :hidden].set(
        jnp.asarray(b1, jnp.float32).reshape(1, hidden))
    w2p = jnp.zeros((h_pad, d_out), jnp.bfloat16).at[:hidden, :].set(
        w2.astype(jnp.bfloat16))
    b2p = jnp.asarray(b2, jnp.float32).reshape(1, d_out)

    def wspec(shape, index_map):
        if single_buffer:                # resident weights: one VMEM copy, not two
            return pl.BlockSpec(shape, index_map, pipeline_mode=pl.Buffered(1))
        return pl.BlockSpec(shape, index_map)

    est_vmem = fixed + per_row * tm
    vmem_limit = int(min(budget, max(2 * est_vmem, 32 << 20)))

    flops = 2 * n_pad * (d_in * h_pad + h_pad * d_out)
    bytes_accessed = (xp.size * x_bytes + w1p.size * 2 + w2p.size * 2
                      + b1p.size * 4 + b2p.size * 4 + n_pad * d_out * x_bytes)

    out = pl.pallas_call(
        mlp_predictor_kernel,
        out_shape=jax.ShapeDtypeStruct((n_pad, d_out), x.dtype),
        grid=(n_tiles, n_hchunks),
        in_specs=[
            pl.BlockSpec(memory_space=pltpu.SMEM),                  # alpha (scalar)
            pl.BlockSpec((tm, d_in), lambda i, k: (i, 0)),          # x tile (pipelined)
            wspec((d_in, h_chunk), lambda i, k: (0, k)),            # W1 chunk
            wspec((1, h_chunk), lambda i, k: (0, k)),               # b1 chunk
            wspec((h_chunk, d_out), lambda i, k: (k, 0)),           # W2 chunk
            wspec((1, d_out), lambda i, k: (0, 0)),                 # b2
        ],
        out_specs=pl.BlockSpec((tm, d_out), lambda i, k: (i, 0)),   # true-width store
        scratch_shapes=[pltpu.VMEM((tm, d_out), jnp.float32)],      # f32 accumulator
        compiler_params=pltpu.CompilerParams(
            dimension_semantics=("parallel", "arbitrary"),
            vmem_limit_bytes=vmem_limit,
        ),
        cost_estimate=pl.CostEstimate(
            flops=flops, transcendentals=0, bytes_accessed=bytes_accessed),
    )(alpha, xp, w1p, b1p, w2p, b2p)

    return out if n_pad == n else out[:n]


def init_linear_params(key, fan_in, fan_out):
    """Deterministic init mimicking nn.Linear.reset_parameters (kaiming-uniform-ish)."""
    kw, kb = jax.random.split(key)
    bound_w = (6.0 / fan_in) ** 0.5 / (5.0 ** 0.5)   # kaiming_uniform(a=sqrt(5))
    bound_b = 1.0 / (fan_in ** 0.5)
    # Stored as [fan_in, fan_out] (transpose of PyTorch's [out, in]).
    w = jax.random.uniform(kw, (fan_in, fan_out), jnp.float32, -bound_w, bound_w)
    b = jax.random.uniform(kb, (1, fan_out), jnp.float32, -bound_b, bound_b)
    return w, b


def _reference_bf16(x, w1, b1, w2, b2, alpha):
    """Pure-JAX reference with matched precision (bf16 MXU inputs, f32 accumulation)."""
    h = jnp.dot(x.astype(jnp.bfloat16), w1.astype(jnp.bfloat16),
                preferred_element_type=jnp.float32) + b1
    h = jnp.where(h > 0, h, alpha[0] * h)
    return jnp.dot(h.astype(jnp.bfloat16), w2.astype(jnp.bfloat16),
                   preferred_element_type=jnp.float32) + b2


if __name__ == "__main__":
    key = jax.random.PRNGKey(0)

    # --- small shapes consistent with the module: MLP_Predictor(32, 32, hidden=64) ---
    batch, input_size, hidden_size, output_size = 8, 32, 64, 32
    kx, k1, k2, kx2, k3, k4 = jax.random.split(key, 6)

    x = jax.random.normal(kx, (batch, input_size), jnp.float32)
    w1, b1 = init_linear_params(k1, input_size, hidden_size)
    w2, b2 = init_linear_params(k2, hidden_size, output_size)
    alpha = jnp.array([0.25], dtype=jnp.float32)     # nn.PReLU(1) default init

    out = mlp_predictor(x, w1, b1, w2, b2, alpha)
    out = jax.block_until_ready(out)
    assert out.shape == (batch, output_size)
    assert out.dtype == x.dtype

    ref = _reference_bf16(x, w1, b1, w2, b2, alpha)
    assert jnp.allclose(out, ref, atol=2e-4, rtol=2e-4)

    # Sanity check against the pure-f32 reference (bf16 input rounding only).
    h_f32 = x @ w1 + b1
    h_f32 = jnp.where(h_f32 > 0, h_f32, alpha[0] * h_f32)
    ref_f32 = h_f32 @ w2 + b2
    assert jnp.allclose(out, ref_f32, atol=1e-1, rtol=1e-1)

    # --- second check: module default hidden=512, non-multiple-of-8 batch ------------
    # Exercises multi-tile batch grid (>=2 tiles), row padding, lane-dense d_out.
    b2_batch, d2_in, d2_hid, d2_out = 300, 256, 512, 256
    x2 = jax.random.normal(kx2, (b2_batch, d2_in), jnp.float32)
    w1b, b1b = init_linear_params(k3, d2_in, d2_hid)
    w2b, b2b = init_linear_params(k4, d2_hid, d2_out)

    out2 = mlp_predictor(x2, w1b, b1b, w2b, b2b, alpha)
    out2 = jax.block_until_ready(out2)
    assert out2.shape == (b2_batch, d2_out)
    ref2 = _reference_bf16(x2, w1b, b1b, w2b, b2b, alpha)
    assert jnp.allclose(out2, ref2, atol=1e-3, rtol=1e-3)

    print("KERNEL_OK")
</pallas_src>

<mosaic_0001>
module attributes {stable_mosaic.version = 11 : i64} {
  func.func @_probe(%arg0: i32, %arg1: memref<8x128xf32, #tpu.memory_space<vmem>>, %arg2: memref<8x128xf32, #tpu.memory_space<vmem>>) attributes {dimension_semantics = [#tpu.dimension_semantics<arbitrary>], iteration_bounds = array<i64: 1>, scalar_prefetch = 0 : i64, scratch_operands = 0 : i64, tpu.core_type = #tpu.core_type<tc>, window_params = [{pipeline_mode = #tpu.pipeline_mode<synchronous>, transform_indices = @transform_0, window_bounds = array<i64: 8, 128>}, {pipeline_mode = #tpu.pipeline_mode<synchronous>, transform_indices = @transform_1, window_bounds = array<i64: 8, 128>}]} {
    %c0 = arith.constant 0 : index
    %c0_0 = arith.constant 0 : index
    %0 = vector.load %arg1[%c0, %c0_0] : memref<8x128xf32, #tpu.memory_space<vmem>>, vector<8x128xf32>
    %c0_1 = arith.constant 0 : index
    %c0_2 = arith.constant 0 : index
    %1 = vector.load %arg2[%c0_1, %c0_2] : memref<8x128xf32, #tpu.memory_space<vmem>>, vector<8x128xf32>
    tpu.vector_store %arg2[%c0_1, %c0_2], %0 {strides = array<i32>} : memref<8x128xf32, #tpu.memory_space<vmem>>, vector<8x128xf32>,
    return
  }
  func.func @transform_0(%arg0: i32) -> (i32, i32) {
    %c0_i32 = arith.constant 0 : i32
    %c0_i32_0 = arith.constant 0 : i32
    %c0_i32_1 = arith.constant 0 : i32
    return %c0_i32, %c0_i32_0 : i32, i32
  }
  func.func @transform_1(%arg0: i32) -> (i32, i32) {
    %c0_i32 = arith.constant 0 : i32
    %c0_i32_0 = arith.constant 0 : i32
    %c0_i32_1 = arith.constant 0 : i32
    return %c0_i32, %c0_i32_0 : i32, i32
  }
}

module attributes {stable_mosaic.version = 11 : i64} {
  func.func @mlp_predictor_kernel(%arg0: i32, %arg1: i32, %arg2: memref<1xf32, #tpu.memory_space<smem>>, %arg3: memref<8x32xf32, #tpu.memory_space<vmem>>, %arg4: memref<32x128xbf16, #tpu.memory_space<vmem>>, %arg5: memref<1x128xf32, #tpu.memory_space<vmem>>, %arg6: memref<128x32xbf16, #tpu.memory_space<vmem>>, %arg7: memref<1x32xf32, #tpu.memory_space<vmem>>, %arg8: memref<8x32xf32, #tpu.memory_space<vmem>>, %arg9: memref<8x32xf32, #tpu.memory_space<vmem>>) attributes {dimension_semantics = [#tpu.dimension_semantics<parallel>, #tpu.dimension_semantics<arbitrary>], iteration_bounds = array<i64: 1, 1>, scalar_prefetch = 0 : i64, scratch_operands = 1 : i64, tpu.core_type = #tpu.core_type<tc>, window_params = [{transform_indices = @transform_0, window_bounds = array<i64: 1>}, {transform_indices = @transform_1, window_bounds = array<i64: 8, 32>}, {transform_indices = @transform_2, window_bounds = array<i64: 32, 128>}, {transform_indices = @transform_3, window_bounds = array<i64: 1, 128>}, {transform_indices = @transform_4, window_bounds = array<i64: 128, 32>}, {pipeline_mode = #tpu.pipeline_mode<synchronous>, transform_indices = @transform_5, window_bounds = array<i64: 1, 32>}, {transform_indices = @transform_6, window_bounds = array<i64: 8, 32>}]} {
    %c0_i32 = arith.constant 0 : i32
    %0 = arith.cmpi eq, %arg1, %c0_i32 : i32
    %1 = arith.extui %0 : i1 to i32
    %c0_i32_0 = arith.constant 0 : i32
    %2 = arith.cmpi ne, %1, %c0_i32_0 : i32
    scf.if %2 {
      %cst_17 = arith.constant 0.000000e+00 : f32
      %25 = vector.broadcast %cst_17 : f32 to vector<8x32xf32>
      %c0_18 = arith.constant 0 : index
      %c0_19 = arith.constant 0 : index
      %26 = vector.load %arg9[%c0_18, %c0_19] : memref<8x32xf32, #tpu.memory_space<vmem>>, vector<8x32xf32>
      tpu.vector_store %arg9[%c0_18, %c0_19], %25 {strides = array<i32>} : memref<8x32xf32, #tpu.memory_space<vmem>>, vector<8x32xf32>,
    } else {
    }
    %c0 = arith.constant 0 : index
    %3 = memref.load %arg2[%c0] : memref<1xf32, #tpu.memory_space<smem>>
    %c0_1 = arith.constant 0 : index
    %c0_2 = arith.constant 0 : index
    %4 = vector.load %arg3[%c0_1, %c0_2] : memref<8x32xf32, #tpu.memory_space<vmem>>, vector<8x32xf32>
    %5 = arith.truncf %4 : vector<8x32xf32> to vector<8x32xbf16>
    %c0_3 = arith.constant 0 : index
    %c0_4 = arith.constant 0 : index
    %6 = vector.load %arg4[%c0_3, %c0_4] : memref<32x128xbf16, #tpu.memory_space<vmem>>, vector<32x128xbf16>
    %cst = arith.constant dense<0.000000e+00> : vector<8x128xf32>
    %7 = tpu.matmul %5, %6, %cst {dimension_numbers = #tpu.dot_dimension_numbers<[1], [0], [0], [1], [0, 0, 1, 1], [], []>} : vector<8x32xbf16>, vector<32x128xbf16>, vector<8x128xf32> -> vector<8x128xf32>
    %c0_5 = arith.constant 0 : index
    %c0_6 = arith.constant 0 : index
    %8 = vector.load %arg5[%c0_5, %c0_6] : memref<1x128xf32, #tpu.memory_space<vmem>>, vector<1x128xf32>
    %9 = vector.broadcast %8 : vector<1x128xf32> to vector<8x128xf32>
    %10 = arith.addf %7, %9 : vector<8x128xf32>
    %cst_7 = arith.constant 0.000000e+00 : f32
    %11 = vector.broadcast %cst_7 : f32 to vector<8x128xf32>
    %12 = arith.cmpf ogt, %10, %11 : vector<8x128xf32>
    %13 = vector.broadcast %3 : f32 to vector<8x128xf32>
    %14 = arith.mulf %13, %10 : vector<8x128xf32>
    %15 = arith.select %12, %10, %14 : vector<8x128xi1>, vector<8x128xf32>
    %c0_8 = arith.constant 0 : index
    %c0_9 = arith.constant 0 : index
    %16 = vector.load %arg9[%c0_8, %c0_9] : memref<8x32xf32, #tpu.memory_space<vmem>>, vector<8x32xf32>
    %17 = arith.truncf %15 : vector<8x128xf32> to vector<8x128xbf16>
    %c0_10 = arith.constant 0 : index
    %c0_11 = arith.constant 0 : index
    %18 = vector.load %arg6[%c0_10, %c0_11] : memref<128x32xbf16, #tpu.memory_space<vmem>>, vector<128x32xbf16>
    %cst_12 = arith.constant dense<0.000000e+00> : vector<8x32xf32>
    %19 = tpu.matmul %17, %18, %cst_12 {dimension_numbers = #tpu.dot_dimension_numbers<[1], [0], [0], [1], [0, 0, 1, 1], [], []>} : vector<8x128xbf16>, vector<128x32xbf16>, vector<8x32xf32> -> vector<8x32xf32>
    %20 = arith.addf %16, %19 : vector<8x32xf32>
    %c0_13 = arith.constant 0 : index
    %c0_14 = arith.constant 0 : index
    %21 = vector.load %arg9[%c0_13, %c0_14] : memref<8x32xf32, #tpu.memory_space<vmem>>, vector<8x32xf32>
    tpu.vector_store %arg9[%c0_13, %c0_14], %20 {strides = array<i32>} : memref<8x32xf32, #tpu.memory_space<vmem>>, vector<8x32xf32>,
    %c0_i32_15 = arith.constant 0 : i32
    %22 = arith.cmpi eq, %arg1, %c0_i32_15 : i32
    %23 = arith.extui %22 : i1 to i32
    %c0_i32_16 = arith.constant 0 : i32
    %24 = arith.cmpi ne, %23, %c0_i32_16 : i32
    scf.if %24 {
      %c0_17 = arith.constant 0 : index
      %c0_18 = arith.constant 0 : index
      %25 = vector.load %arg9[%c0_17, %c0_18] : memref<8x32xf32, #tpu.memory_space<vmem>>, vector<8x32xf32>
      %c0_19 = arith.constant 0 : index
      %c0_20 = arith.constant 0 : index
      %26 = vector.load %arg7[%c0_19, %c0_20] : memref<1x32xf32, #tpu.memory_space<vmem>>, vector<1x32xf32>
      %27 = vector.broadcast %26 : vector<1x32xf32> to vector<8x32xf32>
      %28 = arith.addf %25, %27 : vector<8x32xf32>
      %c0_21 = arith.constant 0 : index
      %c0_22 = arith.constant 0 : index
      %29 = vector.load %arg8[%c0_21, %c0_22] : memref<8x32xf32, #tpu.memory_space<vmem>>, vector<8x32xf32>
      tpu.vector_store %arg8[%c0_21, %c0_22], %28 {strides = array<i32>} : memref<8x32xf32, #tpu.memory_space<vmem>>, vector<8x32xf32>,
    } else {
    }
    return
  }
  func.func @transform_0(%arg0: i32, %arg1: i32) -> i32 {
    %c0_i32 = arith.constant 0 : i32
    %c0_i32_0 = arith.constant 0 : i32
    return %c0_i32 : i32
  }
  func.func @transform_1(%arg0: i32, %arg1: i32) -> (i32, i32) {
    %c0_i32 = arith.constant 0 : i32
    %c0_i32_0 = arith.constant 0 : i32
    return %arg0, %c0_i32 : i32, i32
  }
  func.func @transform_2(%arg0: i32, %arg1: i32) -> (i32, i32) {
    %c0_i32 = arith.constant 0 : i32
    %c0_i32_0 = arith.constant 0 : i32
    return %c0_i32, %arg1 : i32, i32
  }
  func.func @transform_3(%arg0: i32, %arg1: i32) -> (i32, i32) {
    %c0_i32 = arith.constant 0 : i32
    %c0_i32_0 = arith.constant 0 : i32
    return %c0_i32, %arg1 : i32, i32
  }
  func.func @transform_4(%arg0: i32, %arg1: i32) -> (i32, i32) {
    %c0_i32 = arith.constant 0 : i32
    %c0_i32_0 = arith.constant 0 : i32
    return %arg1, %c0_i32 : i32, i32
  }
  func.func @transform_5(%arg0: i32, %arg1: i32) -> (i32, i32) {
    %c0_i32 = arith.constant 0 : i32
    %c0_i32_0 = arith.constant 0 : i32
    %c0_i32_1 = arith.constant 0 : i32
    return %c0_i32, %c0_i32_0 : i32, i32
  }
  func.func @transform_6(%arg0: i32, %arg1: i32) -> (i32, i32) {
    %c0_i32 = arith.constant 0 : i32
    %c0_i32_0 = arith.constant 0 : i32
    return %arg0, %c0_i32 : i32, i32
  }
}

</mosaic_0001>

<bundles_post_ra>
// kernel: tpu_custom_call.1
= control target key start
LH: loop header
LB: loop body
LE: loop exit
PB: predicated region body
PF: predicated region fallthrough
CT: control target
= control target key end

     0   :  { %6 = vsyncpa [#allocation3], 0  ;;  %s124_s0 = inlined_call_operand.hbm [shape: f32[8,128], index: 0, kind: input, shape index: {}]   ;;  %s125_s1 = inlined_call_operand.hbm [shape: f32[8,128], index: 1, kind: output, shape index: {}]  }
   0x1   :  { %7 = vsyncpa [#allocation4], 0  ;;  %s88_s6 = smov [#allocation2]   ;;  %s40_s10 = scalar_lea.hbm %s124_s0, 128 }
   0x2   :  { %s14_s7 = sshll.u32 %s88_s6, 4  ;;  %p41_p0 = scmp.ne.s32.totalorder %s124_s0, %s40_s10  ;;  %s15_s7 = int_to_ptr.vmem [resolvable:$true] %s14_s7 }
   0x3   :  { %p44_p1 = scmp.lt.u32.totalorder %s40_s10, %s124_s0 }
   0x5   :  { %p46_p2 = pnand %p44_p1, %p41_p0 }
   0x7   :  { %49 = shalt.err (!%p46_p2)
}
   0x8   :  { %s50_s15 = scalar_lea.vmem %s15_s7, 128  ;;  %p55_p4 = scmp.lt.s32.totalorder %s15_s7, %s15_s7 }
   0x9   :  { %p51_p3 = scmp.ne.s32.totalorder %s15_s7, %s50_s15  ;;  %p56_p5 = scmp.lt.s32.totalorder %s50_s15, %s50_s15 }
   0xb   :  { %p57_p6 = por %p56_p5, %p55_p4 }
   0xd   :  { %p58_p7 = pnand %p57_p6, %p51_p3 }
   0xf   :  { %61 = shalt.err (!%p58_p7)
}
  0x10   :  { %17 = dma.hbm_to_vmem [thread:$0]  %s124_s0, 128, %s15_s7, [#allocation3]  }
  0x11   :  { %84 = dma.done.wait [#allocation3], 128  }
  0x12   :  { %85 = vsyncadd [#allocation3], 4294967168  ;;  %s89_s18 = smov [#allocation5]   ;;  %v21_v0 = vld [vmem:[#allocation2] sm:$0xff] }
  0x13   :  { %s29_s19 = sshll.u32 %s89_s18, 4  ;;  %22 = vst [vmem:[#allocation5] sm:$0xff] %v21_v0  ;;  %s30_s19 = int_to_ptr.vmem [resolvable:$true] %s29_s19 }
  0x14   :  { %s62_s20 = scalar_lea.vmem %s30_s19, 128  ;;  %p67_p9 = scmp.lt.s32.totalorder %s30_s19, %s30_s19 }
  0x15   :  { %p63_p8 = scmp.ne.s32.totalorder %s30_s19, %s62_s20  ;;  %p68_p10 = scmp.lt.s32.totalorder %s62_s20, %s62_s20 }
  0x17   :  { %p69_p11 = por %p68_p10, %p67_p9 }
  0x19   :  { %p70_p12 = pnand %p69_p11, %p63_p8 }
  0x1b   :  { %73 = shalt.err (!%p70_p12)
}
  0x1c   :  { %s74_s23 = scalar_lea.hbm %s125_s1, 128 }
  0x1d   :  { %p75_p13 = scmp.ne.s32.totalorder %s125_s1, %s74_s23  ;;  %p78_p0 = scmp.lt.u32.totalorder %s74_s23, %s125_s1 }
  0x1f   :  { %p80_p1 = pnand %p78_p0, %p75_p13 }
  0x21   :  { %83 = shalt.err (!%p80_p1)
}
  0x22   :  { %32 = dma.vmem_to_hbm [thread:$0]  %s30_s19, 128, %s125_s1, [#allocation4]  }
  0x23   :  { %86 = dma.done.wait [#allocation4], 128  }
  0x24   :  { %87 = vsyncadd [#allocation4], 4294967168 }
  0x25   :  { %36 = vsyncpa [#allocation3], 1 }
  0x26   :  { %37 = vsyncpa [#allocation4], 1 }

// kernel: tpu_custom_call.1
= control target key start
LH: loop header
LB: loop body
LE: loop exit
PB: predicated region body
PF: predicated region fallthrough
CT: control target
= control target key end

     0   :  { %v331_v1 = vmov 0.0   ;;  %vm332_vm0 = vmmov 0   ;;  %vm30_vm1 = vcmask 261120   ;;  %s427_s0 = inlined_call_operand.<no memory space> [shape: f32[1], index: 0, kind: input, shape index: {}]   ;;  %s428_s1 = inlined_call_operand.vmem [shape: f32[8,32], index: 1, kind: input, shape index: {}]   ;;  %s429_s2 = inlined_call_operand.vmem [shape: bf16[32,128], index: 2, kind: input, shape index: {}]   ;;  %s430_s3 = inlined_call_operand.vmem [shape: f32[1,128], index: 3, kind: input, shape index: {}]   ;;  %s431_s4 = inlined_call_operand.vmem [shape: bf16[128,32], index: 4, kind: input, shape index: {}]   ;;  %s432_s5 = inlined_call_operand.vmem [shape: f32[1,32], index: 5, kind: input, shape index: {}]   ;;  %s433_s6 = inlined_call_operand.hbm [shape: f32[8,32], index: 6, kind: output, shape index: {}]  }
   0x1   :  { %v297_v0 = vld [vmem:[%s429_s2] sm:$0xff]   ;;  %266 = vmatprep.subr.bf16.mxu0 %v331_v1  ;;  %v298_v2 = vld [vmem:[%s429_s2 + $0x8] sm:$0xff]   ;;  %274 = vmatprep.subr.bf16.mxu1 %v331_v1  ;;  %31 = vst.msk [vmem:[#allocation2] sm:$0xff] %vm30_vm1, %v331_v1  ;;  %v301_v7 = vld [vmem:[%s431_s4 + $0x10] sm:$0xff]  }
   0x2   :  { %267 = vmatpush3.bf16.msra.mxu0 %v297_v0  ;;  %270 = vmatprep.mubr.msk.bf16.mxu0 %vm332_vm0, %v331_v1  ;;  %v33_v3 = vld [vmem:[%s428_s1] sm:$0xff]  ;;  %v300_v6 = vld [vmem:[%s431_s4 + $0x8] sm:$0xff]  }
   0x3   :  { %268 = vmatprep.subr.bf16.mxu0 %v331_v1  ;;  %v299_v4 = vld [vmem:[%s431_s4] sm:$0xff]   ;;  %290 = vmatprep.mubr.msk.bf16.mxu1 %vm332_vm0, %v331_v1  ;;  %v34_v5 = vpack.c.bf16 %v33_v3, %v33_v3 }
   0x4   :  { %275 = vmatpush3.bf16.msra.mxu1 %v299_v4 }
   0x5   :  { %276 = vmatprep.subr.bf16.mxu1 %v331_v1 }
   0x6   :  { %269 = vmatpush3.bf16.msra.mxu0 %v298_v2 }
   0x8   :  { %277 = vmatpush3.bf16.msra.mxu1 %v300_v6 }
   0x9   :  { %271 = vmatmul.mubr.msk.bf16.vlgmr.msra.gmra.mrb[0].mxu0 %vm30_vm1, %v34_v5  ;;  %278 = vmatprep.subr.bf16.mxu1 %v331_v1 }
   0xa   :  { %12 = vsyncpa [#allocation5], 0  ;;  %v302_v8 = vld [vmem:[%s431_s4 + $0x18] sm:$0xff]   ;;  %v303_v9 = vld [vmem:[%s431_s4 + $0x20] sm:$0xff]   ;;  %v103_v15 = vstv %s427_s0  ;;  %s333_s0 = smov [#allocation4]  }
   0xb   :  { %v304_v10 = vld [vmem:[%s431_s4 + $0x28] sm:$0xff]   ;;  %v305_v11 = vld [vmem:[%s431_s4 + $0x30] sm:$0xff]   ;;  %v306_v12 = vld [vmem:[%s431_s4 + $0x38] sm:$0xff]   ;;  %s233_s21 = sshll.u32 %s333_s0, 4  ;;  %s234_s21 = int_to_ptr.vmem [resolvable:$true] %s233_s21 }
   0xc   :  { %279 = vmatpush3.bf16.msra.mxu1 %v301_v7  ;;  %v241_v13 = vld [vmem:[%s430_s3] ss:$0 sm:$0xff]  ;;  %s307_s22 = scalar_lea.vmem %s234_s21, 128  ;;  %p312_p1 = scmp.lt.s32.totalorder %s234_s21, %s234_s21 }
   0xd   :  { %280 = vmatprep.subr.bf16.mxu1 %v331_v1  ;;  %v106_v23 = vld [vmem:[#allocation2] sm:$0xff]  ;;  %p308_p0 = scmp.ne.s32.totalorder %s234_s21, %s307_s22  ;;  %p313_p2 = scmp.lt.s32.totalorder %s307_s22, %s307_s22 }
   0xe   :  { %v253_v29 = vld [vmem:[%s432_s5] ss:$0 sm:$0xff] }
   0xf   :  { %p314_p3 = por %p313_p2, %p312_p1 }
  0x10   :  { %281 = vmatpush3.bf16.msra.mxu1 %v302_v8 }
  0x11   :  { %282 = vmatprep.subr.bf16.mxu1 %v331_v1  ;;  %p315_p4 = pnand %p314_p3, %p308_p0 }
  0x14   :  { %283 = vmatpush3.bf16.msra.mxu1 %v303_v9 }
  0x15   :  { %284 = vmatprep.subr.bf16.mxu1 %v331_v1 }
  0x18   :  { %285 = vmatpush3.bf16.msra.mxu1 %v304_v10 }
  0x19   :  { %286 = vmatprep.subr.bf16.mxu1 %v331_v1 }
  0x1c   :  { %287 = vmatpush3.bf16.msra.mxu1 %v305_v11 }
  0x1d   :  { %288 = vmatprep.subr.bf16.mxu1 %v331_v1 }
  0x20   :  { %289 = vmatpush3.bf16.msra.mxu1 %v306_v12 }
  0xdc   :  { %v96_v14 = vpop.f32.mrb[0].mxu0 }
  0xdd   :  { %v97_v16 = vadd.f32 %v241_v13, %v96_v14  ;;  %v272_v17 = vpop.f32.mrb[1].mxu0 }
  0xde   :  { %v99_v18 = vpop.f32.mrb[2].mxu0 }
  0xdf   :  { %vm102_vm2 = vcmp.gt.f32.partialorder %v97_v16, 0.0  ;;  %v104_v19 = vmul.f32 %v103_v15, %v97_v16  ;;  %v273_v20 = vpop.f32.mrb[3].mxu0 }
  0xe1   :  { %v105_v21 = vsel %vm102_vm2, %v97_v16, %v104_v19 }
  0xe2   :  { %v107_v22 = vpack.c.bf16 %v105_v21, %v105_v21 }
  0xe4   :  { %291 = vmatmul.mubr.bf16.vlgmr.msra.gmra.mrb[0].mxu1 %v107_v22 }
 0x1b7   :  { %v206_v24 = vpop.f32.mrb[0].mxu1 }
 0x1b8   :  { %v212_v25 = vadd.f32 %v206_v24, %v106_v23  ;;  %v292_v26 = vpop.f32.mrb[1].mxu1 }
 0x1b9   :  { %v209_v27 = vpop.f32.mrb[2].mxu1 }
 0x1ba   :  { %213 = vst.msk [vmem:[#allocation2] sm:$0xff] %vm30_vm1, %v212_v25  ;;  %v293_v28 = vpop.f32.mrb[3].mxu1 }
 0x1c1   :  { %v217_v30 = vld [vmem:[#allocation2] sm:$0xff] }
 0x1c2   :  { %v225_v31 = vadd.f32 %v253_v29, %v217_v30 }
 0x1c4   :  { %226 = vst.msk [vmem:[#allocation4] sm:$0xff] %vm30_vm1, %v225_v31 }
 0x1c5   :  { %318 = shalt.err (!%p315_p4)
}
 0x1c6   :  { %s319_s25 = scalar_lea.hbm %s433_s6, 128 }
 0x1c7   :  { %p320_p5 = scmp.ne.s32.totalorder %s433_s6, %s319_s25  ;;  %p323_p6 = scmp.lt.u32.totalorder %s319_s25, %s433_s6 }
 0x1c9   :  { %p325_p7 = pnand %p323_p6, %p320_p5 }
 0x1cb   :  { %328 = shalt.err (!%p325_p7)
}
 0x1cc   :  { %236 = dma.vmem_to_hbm [thread:$0]  %s234_s21, 128, %s433_s6, [#allocation5]  }
 0x1cd   :  { %329 = dma.done.wait [#allocation5], 128  }
 0x1ce   :  { %330 = vsyncadd [#allocation5], 4294967168 }
 0x1cf   :  { %240 = vsyncpa [#allocation5], 1 }

</bundles_post_ra>
